<compile_context>
chip_gen: v7x
topology: tpu7x:2x2x1
jax: 0.10.0
libtpu: 0.0.40
codegen_flags: <defaults>
</compile_context>

<pallas_src>
import numpy as np
import jax
import jax.numpy as jnp
from jax.experimental import pallas as pl
from jax.experimental.pallas import tpu as pltpu

_SUBLANES = 8     # native sublane count of a vreg
_LANES = 128      # native lane count of a vreg
_TILE_B = 128     # batch-tile rows for the batched path


def _pad_to(n, m):
    return ((n + m - 1) // m) * m


# ---------------------------------------------------------------------------
# Pallas kernel: 3-layer MLP  (in -> h1 -> h2 -> out_pad).
# Weights are bf16, activations are cast to bf16 at each MXU input,
# accumulation / bias add / ReLU / output store stay f32.
# The same body serves the single-shot (grid=()) and batched (grid=(B//tb,))
# wrappers — only the BlockSpecs differ.
# ---------------------------------------------------------------------------
def _mlp_kernel(x_ref, w1_ref, b1_ref, w2_ref, b2_ref, w3_ref, b3_ref, o_ref):
    x = x_ref[...].astype(jnp.bfloat16)                               # (M, K)
    h = jnp.dot(x, w1_ref[...], preferred_element_type=jnp.float32) + b1_ref[...]
    h = jnp.maximum(h, 0.0)                                           # ReLU (f32)
    h = jnp.dot(h.astype(jnp.bfloat16), w2_ref[...],
                preferred_element_type=jnp.float32) + b2_ref[...]
    h = jnp.maximum(h, 0.0)                                           # ReLU (f32)
    o = jnp.dot(h.astype(jnp.bfloat16), w3_ref[...],
                preferred_element_type=jnp.float32) + b3_ref[...]
    o_ref[...] = o.astype(o_ref.dtype)                                # (M, out_pad)


def _cost_estimate(rows, w1, b1, w2, b2, w3, b3):
    flops = 2 * rows * (w1.shape[0] * w1.shape[1]
                        + w2.shape[0] * w2.shape[1]
                        + w3.shape[0] * w3.shape[1])
    bytes_accessed = ((w1.size + w2.size + w3.size) * 2          # bf16 weights
                      + (b1.size + b2.size + b3.size) * 4        # f32 biases
                      + rows * (w1.shape[0] + w3.shape[1]) * 4)  # f32 act in/out
    return pl.CostEstimate(flops=flops, transcendentals=0,
                           bytes_accessed=bytes_accessed)


def _mlp_pallas_single(x, w1, b1, w2, b2, w3, b3):
    """x: (1, in_pad) f32.  Whole problem resident in VMEM, grid=()."""
    out_pad = w3.shape[1]
    vmem = pl.BlockSpec(memory_space=pltpu.MemorySpace.VMEM)
    return pl.pallas_call(
        _mlp_kernel,
        out_shape=jax.ShapeDtypeStruct((x.shape[0], out_pad), jnp.float32),
        in_specs=[vmem] * 7,
        out_specs=vmem,
        cost_estimate=_cost_estimate(x.shape[0], w1, b1, w2, b2, w3, b3),
    )(x, w1, b1, w2, b2, w3, b3)


def _mlp_pallas_batched(x, w1, b1, w2, b2, w3, b3, tile_b):
    """x: (Bp, in_pad) f32 with Bp % tile_b == 0.  Grid over batch tiles,
    weights VMEM-resident across grid steps (constant index_map)."""
    bp, in_pad = x.shape
    out_pad = w3.shape[1]

    def resident(shape):
        return pl.BlockSpec(shape, lambda i: (0, 0))

    return pl.pallas_call(
        _mlp_kernel,
        out_shape=jax.ShapeDtypeStruct((bp, out_pad), jnp.float32),
        grid=(bp // tile_b,),
        in_specs=[
            pl.BlockSpec((tile_b, in_pad), lambda i: (i, 0)),   # activations: pipelined
            resident(w1.shape), resident(b1.shape),             # weights/biases: resident
            resident(w2.shape), resident(b2.shape),
            resident(w3.shape), resident(b3.shape),
        ],
        out_specs=pl.BlockSpec((tile_b, out_pad), lambda i: (i, 0)),
        compiler_params=pltpu.CompilerParams(
            dimension_semantics=("parallel",)),                 # shards over v7x's 2 TCs
        cost_estimate=_cost_estimate(bp, w1, b1, w2, b2, w3, b3),
    )(x, w1, b1, w2, b2, w3, b3)


# ---------------------------------------------------------------------------
# FeedForwardNN equivalent (parameter setup + glue in plain JAX, all jitted)
# ---------------------------------------------------------------------------
class FeedForwardNNPallas:
    def __init__(self, in_shape, out_shape, hidden_shape=(64, 64),
                 out_activation=None, key=jax.random.PRNGKey(0)):
        assert len(hidden_shape) == 2, "kernel is specialized to 2 hidden layers"
        self.in_shape = tuple(in_shape)
        self.out_shape = tuple(out_shape)
        self.out_activation = out_activation

        in_dim = int(np.prod(in_shape))
        out_dim = int(np.prod(out_shape))
        dims = [in_dim, hidden_shape[0], hidden_shape[1], out_dim]
        # Only the input dim (if ragged) and the output dim get lane padding;
        # hidden dims stay exact (block_shape == full array dims is legal).
        in_pad = _pad_to(in_dim, _LANES)
        out_pad = _pad_to(out_dim, _LANES)
        pdims = [in_pad, hidden_shape[0], hidden_shape[1], out_pad]

        self._in_dim, self._out_dim = in_dim, out_dim
        self._in_pad, self._out_pad = in_pad, out_pad

        # Deterministic init mimicking PyTorch nn.Linear defaults:
        # U(-1/sqrt(fan_in), +1/sqrt(fan_in)) for weight and bias.
        # Stored transposed relative to nn.Linear: (fan_in, fan_out).
        self.params = []          # exact f32 params, used by the reference
        for i in range(3):
            key, kw, kb = jax.random.split(key, 3)
            bound = 1.0 / np.sqrt(dims[i])
            w = jax.random.uniform(kw, (dims[i], dims[i + 1]), jnp.float32,
                                   minval=-bound, maxval=bound)
            b = jax.random.uniform(kb, (1, dims[i + 1]), jnp.float32,
                                   minval=-bound, maxval=bound)
            self.params.append((w, b))

        # Zero-padded, bf16 copies for the kernel (built once at init).
        # Padding is numerically transparent: padded input columns are zero,
        # padded weight rows/cols and bias lanes are zero, so padded output
        # lanes are never read back.
        self._padded_params = []
        for i, (w, b) in enumerate(self.params):
            wp = jnp.zeros((pdims[i], pdims[i + 1]), jnp.float32)
            wp = wp.at[:dims[i], :dims[i + 1]].set(w)
            bp = jnp.zeros((1, pdims[i + 1]), jnp.float32)
            bp = bp.at[:, :dims[i + 1]].set(b)
            self._padded_params.append((wp.astype(jnp.bfloat16), bp))

        out_shape_t = self.out_shape

        def _forward(obs, padded_params):
            # torch.flatten(obs) equivalent; M=1 activation row, no dead tile.
            x = jnp.asarray(obs, jnp.float32).reshape(1, -1)
            if in_pad != in_dim:
                x = jnp.pad(x, ((0, 0), (0, in_pad - in_dim)))
            (w1, b1), (w2, b2), (w3, b3) = padded_params
            out = _mlp_pallas_single(x, w1, b1, w2, b2, w3, b3)[0, :out_dim]
            if out_activation is not None:
                out = out_activation(out)
            if len(out_shape_t) != 1:
                out = out.reshape(out_shape_t)
            return out

        def _forward_batch(obs_b, padded_params):
            b = obs_b.shape[0]
            x = jnp.asarray(obs_b, jnp.float32).reshape(b, -1)
            if in_pad != in_dim:
                x = jnp.pad(x, ((0, 0), (0, in_pad - in_dim)))
            tile_b = min(_TILE_B, _pad_to(b, _SUBLANES))
            bp_rows = _pad_to(b, tile_b)
            if bp_rows != b:
                x = jnp.pad(x, ((0, bp_rows - b), (0, 0)))
            (w1, b1), (w2, b2), (w3, b3) = padded_params
            out = _mlp_pallas_batched(x, w1, b1, w2, b2, w3, b3,
                                      tile_b)[:b, :out_dim]
            if out_activation is not None:
                out = out_activation(out)
            if len(out_shape_t) != 1:
                out = out.reshape((b,) + out_shape_t)
            return out

        # One jit over the whole flatten/pad/kernel/slice/activation/reshape
        # path so XLA fuses the wrapper glue with the pallas_call.
        self._forward = jax.jit(_forward)
        self._forward_batch = jax.jit(_forward_batch)

    def __call__(self, obs):
        return self._forward(obs, self._padded_params)

    def forward_batch(self, obs_batch):
        return self._forward_batch(obs_batch, self._padded_params)


# ---------------------------------------------------------------------------
# Pure-JAX references.
#   use_bf16_weights=True  : identical bf16-weight / f32-accumulate math as
#                            the kernel (tight tolerance check).
#   use_bf16_weights=False : exact f32 math of the original PyTorch module
#                            (loose tolerance; documents bf16 quantization).
# ---------------------------------------------------------------------------
def _reference(obs, model, use_bf16_weights=False):
    x = jnp.asarray(obs, jnp.float32).reshape(1, -1)
    if use_bf16_weights:
        if model._in_pad != model._in_dim:
            x = jnp.pad(x, ((0, 0), (0, model._in_pad - model._in_dim)))
        (w1, b1), (w2, b2), (w3, b3) = model._padded_params
        h = jnp.maximum(jnp.dot(x.astype(jnp.bfloat16), w1,
                                preferred_element_type=jnp.float32) + b1, 0.0)
        h = jnp.maximum(jnp.dot(h.astype(jnp.bfloat16), w2,
                                preferred_element_type=jnp.float32) + b2, 0.0)
        o = (jnp.dot(h.astype(jnp.bfloat16), w3,
                     preferred_element_type=jnp.float32) + b3)[0, :model._out_dim]
    else:
        (w1, b1), (w2, b2), (w3, b3) = model.params
        h = jnp.maximum(x @ w1 + b1, 0.0)
        h = jnp.maximum(h @ w2 + b2, 0.0)
        o = (h @ w3 + b3).reshape(-1)
    if model.out_activation is not None:
        o = model.out_activation(o)
    if len(model.out_shape) != 1:
        o = o.reshape(model.out_shape)
    return o


if __name__ == "__main__":
    key = jax.random.PRNGKey(0)
    in_shape = (4, 16, 16)      # flattened to in_dim = 1024
    out_shape = (2, 4)          # out_dim = 8
    hidden_shape = (64, 64)
    batch = 16

    key, k_obs, k_batch, k_params = jax.random.split(key, 4)
    obs = jax.random.normal(k_obs, in_shape, jnp.float32)
    obs_batch = jax.random.normal(k_batch, (batch,) + in_shape, jnp.float32)

    model = FeedForwardNNPallas(in_shape, out_shape, hidden_shape,
                                out_activation=None, key=k_params)

    # --- single observation (matches the PyTorch module's forward()) -------
    out = jax.block_until_ready(model(obs))
    assert out.shape == out_shape, (out.shape, out_shape)

    ref_bf16 = _reference(obs, model, use_bf16_weights=True)
    ref_f32 = _reference(obs, model, use_bf16_weights=False)
    np.testing.assert_allclose(np.asarray(out), np.asarray(ref_bf16),
                               rtol=1e-3, atol=1e-3)
    np.testing.assert_allclose(np.asarray(out), np.asarray(ref_f32),
                               rtol=5e-2, atol=5e-2)

    # --- batched path (grid over batch tiles, weights VMEM-resident) -------
    out_b = jax.block_until_ready(model.forward_batch(obs_batch))
    assert out_b.shape == (batch,) + out_shape, out_b.shape

    ref_b = jnp.stack(
        [_reference(obs_batch[i], model, use_bf16_weights=True).reshape(-1)
         for i in range(batch)]).reshape((batch,) + out_shape)
    np.testing.assert_allclose(np.asarray(out_b), np.asarray(ref_b),
                               rtol=1e-3, atol=1e-3)

    print("KERNEL_OK")
</pallas_src>

<mosaic_0001>
module attributes {stable_mosaic.version = 11 : i64} {
  func.func @_mlp_kernel(%arg0: memref<1x1024xf32, #tpu.memory_space<vmem>>, %arg1: memref<1024x64xbf16, #tpu.memory_space<vmem>>, %arg2: memref<1x64xf32, #tpu.memory_space<vmem>>, %arg3: memref<64x64xbf16, #tpu.memory_space<vmem>>, %arg4: memref<1x64xf32, #tpu.memory_space<vmem>>, %arg5: memref<64x128xbf16, #tpu.memory_space<vmem>>, %arg6: memref<1x128xf32, #tpu.memory_space<vmem>>, %arg7: memref<1x128xf32, #tpu.memory_space<vmem>>) attributes {dimension_semantics = [], scalar_prefetch = 0 : i64, scratch_operands = 0 : i64, tpu.core_type = #tpu.core_type<tc>} {
    %c0 = arith.constant 0 : index
    %c0_0 = arith.constant 0 : index
    %0 = vector.load %arg0[%c0, %c0_0] : memref<1x1024xf32, #tpu.memory_space<vmem>>, vector<1x1024xf32>
    %1 = arith.truncf %0 : vector<1x1024xf32> to vector<1x1024xbf16>
    %c0_1 = arith.constant 0 : index
    %c0_2 = arith.constant 0 : index
    %2 = vector.load %arg1[%c0_1, %c0_2] : memref<1024x64xbf16, #tpu.memory_space<vmem>>, vector<1024x64xbf16>
    %cst = arith.constant dense<0.000000e+00> : vector<1x64xf32>
    %3 = tpu.matmul %1, %2, %cst {dimension_numbers = #tpu.dot_dimension_numbers<[1], [0], [0], [1], [0, 0, 1, 1], [], []>} : vector<1x1024xbf16>, vector<1024x64xbf16>, vector<1x64xf32> -> vector<1x64xf32>
    %c0_3 = arith.constant 0 : index
    %c0_4 = arith.constant 0 : index
    %4 = vector.load %arg2[%c0_3, %c0_4] : memref<1x64xf32, #tpu.memory_space<vmem>>, vector<1x64xf32>
    %5 = arith.addf %3, %4 : vector<1x64xf32>
    %cst_5 = arith.constant 0.000000e+00 : f32
    %6 = vector.broadcast %cst_5 : f32 to vector<1x64xf32>
    %7 = arith.maximumf %5, %6 : vector<1x64xf32>
    %8 = arith.truncf %7 : vector<1x64xf32> to vector<1x64xbf16>
    %c0_6 = arith.constant 0 : index
    %c0_7 = arith.constant 0 : index
    %9 = vector.load %arg3[%c0_6, %c0_7] : memref<64x64xbf16, #tpu.memory_space<vmem>>, vector<64x64xbf16>
    %cst_8 = arith.constant dense<0.000000e+00> : vector<1x64xf32>
    %10 = tpu.matmul %8, %9, %cst_8 {dimension_numbers = #tpu.dot_dimension_numbers<[1], [0], [0], [1], [0, 0, 1, 1], [], []>} : vector<1x64xbf16>, vector<64x64xbf16>, vector<1x64xf32> -> vector<1x64xf32>
    %c0_9 = arith.constant 0 : index
    %c0_10 = arith.constant 0 : index
    %11 = vector.load %arg4[%c0_9, %c0_10] : memref<1x64xf32, #tpu.memory_space<vmem>>, vector<1x64xf32>
    %12 = arith.addf %10, %11 : vector<1x64xf32>
    %cst_11 = arith.constant 0.000000e+00 : f32
    %13 = vector.broadcast %cst_11 : f32 to vector<1x64xf32>
    %14 = arith.maximumf %12, %13 : vector<1x64xf32>
    %15 = arith.truncf %14 : vector<1x64xf32> to vector<1x64xbf16>
    %c0_12 = arith.constant 0 : index
    %c0_13 = arith.constant 0 : index
    %16 = vector.load %arg5[%c0_12, %c0_13] : memref<64x128xbf16, #tpu.memory_space<vmem>>, vector<64x128xbf16>
    %cst_14 = arith.constant dense<0.000000e+00> : vector<1x128xf32>
    %17 = tpu.matmul %15, %16, %cst_14 {dimension_numbers = #tpu.dot_dimension_numbers<[1], [0], [0], [1], [0, 0, 1, 1], [], []>} : vector<1x64xbf16>, vector<64x128xbf16>, vector<1x128xf32> -> vector<1x128xf32>
    %c0_15 = arith.constant 0 : index
    %c0_16 = arith.constant 0 : index
    %18 = vector.load %arg6[%c0_15, %c0_16] : memref<1x128xf32, #tpu.memory_space<vmem>>, vector<1x128xf32>
    %19 = arith.addf %17, %18 : vector<1x128xf32>
    %c0_17 = arith.constant 0 : index
    %c0_18 = arith.constant 0 : index
    %20 = vector.load %arg7[%c0_17, %c0_18] : memref<1x128xf32, #tpu.memory_space<vmem>>, vector<1x128xf32>
    tpu.vector_store %arg7[%c0_17, %c0_18], %19 {strides = array<i32>} : memref<1x128xf32, #tpu.memory_space<vmem>>, vector<1x128xf32>,
    return
  }
}

</mosaic_0001>

<bundles_post_ra>
// kernel: squeeze.1
= control target key start
LH: loop header
LB: loop body
LE: loop exit
PB: predicated region body
PF: predicated region fallthrough
CT: control target
= control target key end

     0   :  { %s85_s0 = inlined_call_operand.vmem [shape: f32[8], index: 0, kind: input, shape index: {}]   ;;  %s86_s1 = inlined_call_operand.hbm [shape: f32[2,4], index: 1, kind: output, shape index: {}]  }
   0x1   :  { %v5_v0 = vld [vmem:[%s85_s0] sm:$0x1] }
   0x2   :  { %2 = vsyncpa [#allocation1], 0  ;;  %6 = vst [vmem:[#allocation3] sm:$0x1] %v5_v0  ;;  %vm8_vm0 = vcmask 31744   ;;  %s58_s0 = smov 124  }
   0x3   :  { %s59_s8 = smov [#allocation0]  }
   0x4   :  { %s26_s9 = sshll.u32 %s59_s8, 4  ;;  %s27_s9 = int_to_ptr.vmem [resolvable:$true] %s26_s9 }
   0x5   :  { %s34_s10 = scalar_lea.vmem %s27_s9, 32  ;;  %p39_p1 = scmp.lt.s32.totalorder %s27_s9, %s27_s9 }
   0x6   :  { %p35_p0 = scmp.ne.s32.totalorder %s27_s9, %s34_s10  ;;  %p40_p2 = scmp.lt.s32.totalorder %s34_s10, %s34_s10 }
   0x8   :  { %p41_p3 = por %p40_p2, %p39_p1 }
   0x9   :  { %v10_v1 = vld [vmem:[#allocation3] sm:$0x1]  }
   0xa   :  { %v7_v2 = vld [vmem:[#allocation3] sm:$0x1]   ;;  %11 = vrot.lane.b32.xlu0 %v10_v1, %s58_s0  ;;  %p42_p4 = pnand %p41_p3, %p35_p0 }
   0xb   :  { %9 = vst.msk [vmem:[#allocation2] sm:$0x1] %vm8_vm0, %v7_v2  }
  0x7c   :  { %v12_v3 = vpop.permute.xlu0 %11  }
  0x7d   :  { %15 = vst.msk [vmem:[#allocation2 + $0x1] sm:$0x1] %vm8_vm0, %v12_v3  }
  0x84   :  { %v19_v4 = vld [vmem:[#allocation2] sm:$0x3] }
  0x85   :  { %21 = vst [vmem:[#allocation0] sm:$0x3] %v19_v4 }
  0x86   :  { %45 = shalt.err (!%p42_p4)
}
  0x87   :  { %s46_s13 = scalar_lea.hbm %s86_s1, 32 }
  0x88   :  { %p47_p5 = scmp.ne.s32.totalorder %s86_s1, %s46_s13  ;;  %p50_p6 = scmp.lt.u32.totalorder %s46_s13, %s86_s1 }
  0x8a   :  { %p52_p7 = pnand %p50_p6, %p47_p5 }
  0x8c   :  { %55 = shalt.err (!%p52_p7)
}
  0x8d   :  { %29 = dma.vmem_to_hbm [thread:$0]  %s27_s9, 32, %s86_s1, [#allocation1]  }
  0x8e   :  { %56 = dma.done.wait [#allocation1], 32  }
  0x8f   :  { %57 = vsyncadd [#allocation1], 4294967264 }
  0x90   :  { %31 = vsyncpa [#allocation1], 1 }

// kernel: _forward.1
= control target key start
LH: loop header
LB: loop body
LE: loop exit
PB: predicated region body
PF: predicated region fallthrough
CT: control target
= control target key end

     0   :  { %v29_v18 = vlaneseq  ;;  %vm1183_vm0 = vmmov 0   ;;  %vm785_vm1 = vcmask 523264   ;;  %s1477_s1 = inlined_call_operand.vmem [shape: bf16[1024,64], index: 1, kind: input, shape index: {}]   ;;  %s1478_s0 = inlined_call_operand.vmem [shape: f32[1,1024], index: 0, kind: input, shape index: {}]   ;;  %s1479_s3 = inlined_call_operand.vmem [shape: bf16[64,64], index: 3, kind: input, shape index: {}]   ;;  %s1480_s5 = inlined_call_operand.vmem [shape: bf16[64,128], index: 5, kind: input, shape index: {}]   ;;  %s1481_s2 = inlined_call_operand.vmem [shape: f32[1,64], index: 2, kind: input, shape index: {}]   ;;  %s1482_s4 = inlined_call_operand.vmem [shape: f32[1,64], index: 4, kind: input, shape index: {}]   ;;  %s1483_s6 = inlined_call_operand.vmem [shape: f32[1,128], index: 6, kind: input, shape index: {}]   ;;  %s1484_s7 = inlined_call_operand.vmem [shape: f32[1,128], index: 7, kind: output, shape index: {}]  }
   0x1   :  { %v1110_v0 = vld [vmem:[%s1477_s1 + $0x40] sm:$0xff]   ;;  %v1114_v4 = vld [vmem:[%s1477_s1 + $0x48] sm:$0xff]   ;;  %v1118_v8 = vld [vmem:[%s1477_s1 + $0x50] sm:$0xff]  }
   0x2   :  { %v1111_v1 = vld [vmem:[%s1477_s1 + $0xc0] sm:$0xff]   ;;  %986 = vmatprep.subr.bf16.mxu0 %v1110_v0  ;;  %v1115_v5 = vld [vmem:[%s1477_s1 + $0xc8] sm:$0xff]   ;;  %v1119_v9 = vld [vmem:[%s1477_s1 + $0xd0] sm:$0xff]   ;;  %v1290_v23 = vshrl.u32 %v29_v18, 7 }
   0x3   :  { %v1112_v2 = vld [vmem:[%s1477_s1] sm:$0xff]   ;;  %1008 = vmatprep.subr.bf16.mxu1 %v1111_v1  ;;  %v1116_v6 = vld [vmem:[%s1477_s1 + $0x8] sm:$0xff]   ;;  %v1120_v10 = vld [vmem:[%s1477_s1 + $0x10] sm:$0xff]  }
   0x4   :  { %v1113_v3 = vld [vmem:[%s1477_s1 + $0x80] sm:$0xff]   ;;  %987 = vmatpush3.bf16.msra.mxu0 %v1112_v2  ;;  %v1117_v7 = vld [vmem:[%s1477_s1 + $0x88] sm:$0xff]   ;;  %v1121_v11 = vld [vmem:[%s1477_s1 + $0x90] sm:$0xff]   ;;  %v35_v28 = vsub.s32 1, %v1290_v23  ;;  %v43_v30 = vsub.s32 3, %v1290_v23  ;;  %v31_v32 = vsub.s32 0, %v1290_v23 }
   0x5   :  { %1009 = vmatpush3.bf16.msra.mxu1 %v1113_v3  ;;  %988 = vmatprep.subr.bf16.mxu0 %v1114_v4  ;;  %v1122_v12 = vld [vmem:[%s1477_s1 + $0x58] sm:$0xff]   ;;  %v1126_v16 = vld [vmem:[%s1477_s1 + $0x60] sm:$0xff]   ;;  %v1130_v21 = vld [vmem:[%s1477_s1 + $0x68] sm:$0xff]   ;;  %v39_v34 = vsub.s32 2, %v1290_v23  ;;  %v51_v36 = vsub.s32 5, %v1290_v23  ;;  %v59_v38 = vsub.s32 7, %v1290_v23 }
   0x6   :  { %1010 = vmatprep.subr.bf16.mxu1 %v1115_v5  ;;  %v1123_v13 = vld [vmem:[%s1477_s1 + $0xd8] sm:$0xff]   ;;  %v1127_v17 = vld [vmem:[%s1477_s1 + $0xe0] sm:$0xff]   ;;  %v1131_v22 = vld [vmem:[%s1477_s1 + $0xe8] sm:$0xff]  }
   0x7   :  { %v1124_v14 = vld [vmem:[%s1477_s1 + $0x18] sm:$0xff]   ;;  %v1128_v19 = vld [vmem:[%s1477_s1 + $0x20] sm:$0xff]   ;;  %v1132_v24 = vld [vmem:[%s1477_s1 + $0x28] sm:$0xff]  }
   0x8   :  { %989 = vmatpush3.bf16.msra.mxu0 %v1116_v6  ;;  %v1125_v15 = vld [vmem:[%s1477_s1 + $0x98] sm:$0xff]   ;;  %v1129_v20 = vld [vmem:[%s1477_s1 + $0xa0] sm:$0xff]   ;;  %v1133_v25 = vld [vmem:[%s1477_s1 + $0xa8] sm:$0xff]  }
   0x9   :  { %1011 = vmatpush3.bf16.msra.mxu1 %v1117_v7  ;;  %990 = vmatprep.subr.bf16.mxu0 %v1118_v8  ;;  %v1134_v26 = vld [vmem:[%s1477_s1 + $0x70] sm:$0xff]   ;;  %v1138_v33 = vld [vmem:[%s1477_s1 + $0x78] sm:$0xff]   ;;  %v1331_v40 = vld [vmem:[%s1478_s0] sm:$0xff] }
   0xa   :  { %1012 = vmatprep.subr.bf16.mxu1 %v1119_v9  ;;  %v1135_v27 = vld [vmem:[%s1477_s1 + $0xf0] sm:$0xff]   ;;  %v1139_v35 = vld [vmem:[%s1477_s1 + $0xf8] sm:$0xff]   ;;  %v36_v41 = vrot.slane %v1331_v40, %v35_v28  ;;  %v44_v42 = vrot.slane %v1331_v40, %v43_v30  ;;  %v32_v43 = vrot.slane %v1331_v40, %v31_v32  ;;  %v40_v44 = vrot.slane %v1331_v40, %v39_v34  ;;  %v1142_v45 = vld [vmem:[%s1477_s1 + $0x140] sm:$0xff]  }
   0xb   :  { %v1136_v29 = vld [vmem:[%s1477_s1 + $0x30] sm:$0xff]   ;;  %v1140_v37 = vld [vmem:[%s1477_s1 + $0x38] sm:$0xff]   ;;  %v1143_v46 = vld [vmem:[%s1477_s1 + $0x1c0] sm:$0xff]   ;;  %v52_v47 = vrot.slane %v1331_v40, %v51_v36  ;;  %v60_v48 = vrot.slane %v1331_v40, %v59_v38 }
   0xc   :  { %991 = vmatpush3.bf16.msra.mxu0 %v1120_v10  ;;  %v1137_v31 = vld [vmem:[%s1477_s1 + $0xb0] sm:$0xff]   ;;  %v1141_v39 = vld [vmem:[%s1477_s1 + $0xb8] sm:$0xff]   ;;  %v70_v49 = vpack.c.bf16 %v36_v41, %v36_v41  ;;  %v72_v50 = vpack.c.bf16 %v44_v42, %v44_v42  ;;  %v69_v51 = vpack.c.bf16 %v32_v43, %v32_v43  ;;  %v71_v52 = vpack.c.bf16 %v40_v44, %v40_v44  ;;  %v1144_v53 = vld [vmem:[%s1477_s1 + $0x100] sm:$0xff]  }
   0xd   :  { %1013 = vmatpush3.bf16.msra.mxu1 %v1121_v11  ;;  %992 = vmatprep.subr.bf16.mxu0 %v1122_v12  ;;  %v1145_v54 = vld [vmem:[%s1477_s1 + $0x180] sm:$0xff]   ;;  %v1146_v55 = vld [vmem:[%s1477_s1 + $0x148] sm:$0xff]   ;;  %v74_v56 = vpack.c.bf16 %v52_v47, %v52_v47  ;;  %v76_v57 = vpack.c.bf16 %v60_v48, %v60_v48  ;;  %v1150_v61 = vld [vmem:[%s1477_s1 + $0x150] sm:$0xff]  }
   0xe   :  { %1014 = vmatprep.subr.bf16.mxu1 %v1123_v13  ;;  %622 = vmatprep.mubr.bf16.mxu0 %v70_v49  ;;  %v1147_v58 = vld [vmem:[%s1477_s1 + $0x1c8] sm:$0xff]   ;;  %v1151_v62 = vld [vmem:[%s1477_s1 + $0x1d0] sm:$0xff]   ;;  %v1154_v1 = vld [vmem:[%s1477_s1 + $0x158] sm:$0xff]  }
   0xf   :  { %662 = vmatprep.mubr.bf16.mxu1 %v72_v50  ;;  %v1148_v59 = vld [vmem:[%s1477_s1 + $0x108] sm:$0xff]   ;;  %v1152_v63 = vld [vmem:[%s1477_s1 + $0x110] sm:$0xff]   ;;  %v1155_v2 = vld [vmem:[%s1477_s1 + $0x1d8] sm:$0xff]  }
  0x10   :  { %993 = vmatpush3.bf16.msra.mxu0 %v1124_v14  ;;  %v1149_v60 = vld [vmem:[%s1477_s1 + $0x188] sm:$0xff]   ;;  %v1153_v0 = vld [vmem:[%s1477_s1 + $0x190] sm:$0xff]   ;;  %v1156_v3 = vld [vmem:[%s1477_s1 + $0x118] sm:$0xff]   ;;  %v47_v14 = vsub.s32 4, %v1290_v23 }
  0x11   :  { %1015 = vmatpush3.bf16.msra.mxu1 %v1125_v15  ;;  %994 = vmatprep.subr.bf16.mxu0 %v1126_v16  ;;  %v1157_v4 = vld [vmem:[%s1477_s1 + $0x198] sm:$0xff]   ;;  %v1158_v5 = vld [vmem:[%s1477_s1 + $0x160] sm:$0xff]   ;;  %v1162_v9 = vld [vmem:[%s1477_s1 + $0x168] sm:$0xff]   ;;  %v55_v16 = vsub.s32 6, %v1290_v23 }
  0x12   :  { %1016 = vmatprep.subr.bf16.mxu1 %v1127_v17  ;;  %v1159_v6 = vld [vmem:[%s1477_s1 + $0x1e0] sm:$0xff]   ;;  %v1163_v10 = vld [vmem:[%s1477_s1 + $0x1e8] sm:$0xff]   ;;  %v1166_v13 = vld [vmem:[%s1477_s1 + $0x170] sm:$0xff]  }
  0x13   :  { %v1160_v7 = vld [vmem:[%s1477_s1 + $0x120] sm:$0xff]   ;;  %v1164_v11 = vld [vmem:[%s1477_s1 + $0x128] sm:$0xff]   ;;  %v1167_v15 = vld [vmem:[%s1477_s1 + $0x1f0] sm:$0xff]  }
  0x14   :  { %995 = vmatpush3.bf16.msra.mxu0 %v1128_v19  ;;  %v1161_v8 = vld [vmem:[%s1477_s1 + $0x1a0] sm:$0xff]   ;;  %v1165_v12 = vld [vmem:[%s1477_s1 + $0x1a8] sm:$0xff]   ;;  %v1168_v17 = vld [vmem:[%s1477_s1 + $0x130] sm:$0xff]  }
  0x15   :  { %1017 = vmatpush3.bf16.msra.mxu1 %v1129_v20  ;;  %996 = vmatprep.subr.bf16.mxu0 %v1130_v21  ;;  %v1169_v18 = vld [vmem:[%s1477_s1 + $0x1b0] sm:$0xff]   ;;  %v1170_v19 = vld [vmem:[%s1477_s1 + $0x178] sm:$0xff]   ;;  %v48_v21 = vrot.slane %v1331_v40, %v47_v14  ;;  %v1174_v28 = vld [vmem:[%s1479_s3] sm:$0xff]  }
  0x16   :  { %1018 = vmatprep.subr.bf16.mxu1 %v1131_v22  ;;  %v1171_v20 = vld [vmem:[%s1477_s1 + $0x1f8] sm:$0xff]   ;;  %v56_v22 = vrot.slane %v1331_v40, %v55_v16  ;;  %v1176_v30 = vld [vmem:[%s1479_s3 + $0x10] sm:$0xff]   ;;  %v1178_v32 = vld [vmem:[%s1480_s5] sm:$0xff]  }
  0x17   :  { %v1172_v23 = vld [vmem:[%s1477_s1 + $0x138] sm:$0xff]   ;;  %v205_v36 = vld [vmem:[%s1481_s2] sm:$0x1] }
  0x18   :  { %997 = vmatpush3.bf16.msra.mxu0 %v1132_v24  ;;  %v1173_v24 = vld [vmem:[%s1477_s1 + $0x1b8] sm:$0xff]  }
  0x19   :  { %1019 = vmatpush3.bf16.msra.mxu1 %v1133_v25  ;;  %998 = vmatprep.subr.bf16.mxu0 %v1134_v26  ;;  %v73_v25 = vpack.c.bf16 %v48_v21, %v48_v21  ;;  %v75_v26 = vpack.c.bf16 %v56_v22, %v56_v22 }
  0x1a   :  { %1020 = vmatprep.subr.bf16.mxu1 %v1135_v27  ;;  %v1182_v27 = vmov 0.0  }
  0x1c   :  { %999 = vmatpush3.bf16.msra.mxu0 %v1136_v29  ;;  %v1175_v29 = vld [vmem:[%s1479_s3 + $0x8] sm:$0xff]  }
  0x1d   :  { %1021 = vmatpush3.bf16.msra.mxu1 %v1137_v31  ;;  %1000 = vmatprep.subr.bf16.mxu0 %v1138_v33  ;;  %v1177_v31 = vld [vmem:[%s1479_s3 + $0x18] sm:$0xff]   ;;  %v1179_v33 = vld [vmem:[%s1480_s5 + $0x8] sm:$0xff]  }
  0x1e   :  { %1022 = vmatprep.subr.bf16.mxu1 %v1139_v35 }
  0x20   :  { %1001 = vmatpush3.bf16.msra.mxu0 %v1140_v37 }
  0x21   :  { %1023 = vmatpush3.bf16.msra.mxu1 %v1141_v39  ;;  %1030 = vmatprep.subr.bf16.mxu0 %v1142_v45 }
  0x22   :  { %1052 = vmatprep.subr.bf16.mxu1 %v1143_v46 }
  0x23   :  { %623 = vmatmul.mubr.bf16.vlgmr.msra.gmra.mrb[0].mxu0 %v69_v51 }
  0x24   :  { %663 = vmatmul.mubr.bf16.vlgmr.msra.gmra.mrb[0].mxu1 %v71_v52  ;;  %1031 = vmatpush3.bf16.msra.mxu0 %v1144_v53 }
  0x25   :  { %1053 = vmatpush3.bf16.msra.mxu1 %v1145_v54  ;;  %1032 = vmatprep.subr.bf16.mxu0 %v1146_v55 }
  0x26   :  { %1054 = vmatprep.subr.bf16.mxu1 %v1147_v58  ;;  %702 = vmatprep.mubr.bf16.mxu0 %v74_v56 }
  0x27   :  { %742 = vmatprep.mubr.bf16.mxu1 %v76_v57 }
  0x28   :  { %1033 = vmatpush3.bf16.msra.mxu0 %v1148_v59 }
  0x29   :  { %1055 = vmatpush3.bf16.msra.mxu1 %v1149_v60  ;;  %1034 = vmatprep.subr.bf16.mxu0 %v1150_v61  ;;  %v1180_v61 = vld [vmem:[%s1480_s5 + $0x10] sm:$0xff]  }
  0x2a   :  { %1056 = vmatprep.subr.bf16.mxu1 %v1151_v62  ;;  %v1181_v62 = vld [vmem:[%s1480_s5 + $0x18] sm:$0xff]  }
  0x2c   :  { %1035 = vmatpush3.bf16.msra.mxu0 %v1152_v63  ;;  %v760_v63 = vld [vmem:[%s1482_s4] sm:$0x1] }
  0x2d   :  { %1057 = vmatpush3.bf16.msra.mxu1 %v1153_v0  ;;  %1036 = vmatprep.subr.bf16.mxu0 %v1154_v1 }
  0x2e   :  { %1058 = vmatprep.subr.bf16.mxu1 %v1155_v2 }
  0x30   :  { %1037 = vmatpush3.bf16.msra.mxu0 %v1156_v3 }
  0x31   :  { %1059 = vmatpush3.bf16.msra.mxu1 %v1157_v4  ;;  %1038 = vmatprep.subr.bf16.mxu0 %v1158_v5 }
  0x32   :  { %1060 = vmatprep.subr.bf16.mxu1 %v1159_v6 }
  0x34   :  { %1039 = vmatpush3.bf16.msra.mxu0 %v1160_v7  ;;  %v839_v7 = vld [vmem:[%s1483_s6] sm:$0x1] }
  0x35   :  { %1061 = vmatpush3.bf16.msra.mxu1 %v1161_v8  ;;  %1040 = vmatprep.subr.bf16.mxu0 %v1162_v9 }
  0x36   :  { %1062 = vmatprep.subr.bf16.mxu1 %v1163_v10 }
  0x38   :  { %1041 = vmatpush3.bf16.msra.mxu0 %v1164_v11 }
  0x39   :  { %1063 = vmatpush3.bf16.msra.mxu1 %v1165_v12  ;;  %1042 = vmatprep.subr.bf16.mxu0 %v1166_v13 }
  0x3a   :  { %1064 = vmatprep.subr.bf16.mxu1 %v1167_v15 }
  0x3c   :  { %1043 = vmatpush3.bf16.msra.mxu0 %v1168_v17 }
  0x3d   :  { %1065 = vmatpush3.bf16.msra.mxu1 %v1169_v18  ;;  %1044 = vmatprep.subr.bf16.mxu0 %v1170_v19 }
  0x3e   :  { %1066 = vmatprep.subr.bf16.mxu1 %v1171_v20 }
  0x40   :  { %1045 = vmatpush3.bf16.msra.mxu0 %v1172_v23 }
  0x41   :  { %1067 = vmatpush3.bf16.msra.mxu1 %v1173_v24  ;;  %1084 = vmatprep.subr.bf16.mxu0 %v1182_v27 }
  0x42   :  { %1096 = vmatprep.subr.bf16.mxu1 %v1182_v27 }
  0x43   :  { %703 = vmatmul.mubr.bf16.vlgmr.msra.gmra.mrb[4].mxu0 %v73_v25 }
  0x44   :  { %743 = vmatmul.mubr.bf16.vlgmr.msra.gmra.mrb[4].mxu1 %v75_v26  ;;  %1085 = vmatpush3.bf16.msra.mxu0 %v1174_v28 }
  0x45   :  { %1086 = vmatprep.subr.bf16.mxu0 %v1182_v27  ;;  %1092 = vmatprep.mubr.msk.bf16.mxu0 %vm1183_vm0, %v1182_v27 }
  0x46   :  { %1104 = vmatprep.mubr.msk.bf16.mxu1 %vm1183_vm0, %v1182_v27  ;;  %1097 = vmatpush3.bf16.msra.mxu1 %v1178_v32 }
  0x47   :  { %1098 = vmatprep.subr.bf16.mxu1 %v1182_v27 }
  0x48   :  { %1087 = vmatpush3.bf16.msra.mxu0 %v1175_v29 }
  0x49   :  { %1088 = vmatprep.subr.bf16.mxu0 %v1182_v27 }
  0x4a   :  { %1099 = vmatpush3.bf16.msra.mxu1 %v1179_v33 }
  0x4b   :  { %1100 = vmatprep.subr.bf16.mxu1 %v1182_v27 }
  0x4c   :  { %1089 = vmatpush3.bf16.msra.mxu0 %v1176_v30 }
  0x4d   :  { %1090 = vmatprep.subr.bf16.mxu0 %v1182_v27 }
  0x4e   :  { %1101 = vmatpush3.bf16.msra.mxu1 %v1180_v61 }
  0x4f   :  { %1102 = vmatprep.subr.bf16.mxu1 %v1182_v27 }
  0x50   :  { %1091 = vmatpush3.bf16.msra.mxu0 %v1177_v31 }
  0x52   :  { %1103 = vmatpush3.bf16.msra.mxu1 %v1181_v62 }
  0xf6   :  { %v1002_v34 = vpop.f32.mrb[0].mxu0 }
  0xf7   :  { %v1024_v35 = vpop.f32.mrb[0].mxu1  ;;  %v1003_v37 = vpop.f32.mrb[1].mxu0 }
  0xf8   :  { %v1025_v38 = vpop.f32.mrb[1].mxu1  ;;  %v1004_v39 = vadd.f32 %v1003_v37, %v1002_v34  ;;  %v1005_v41 = vpop.f32.mrb[2].mxu0 }
  0xf9   :  { %v1026_v40 = vadd.f32 %v1025_v38, %v1024_v35  ;;  %v1027_v42 = vpop.f32.mrb[2].mxu1  ;;  %v1006_v43 = vpop.f32.mrb[3].mxu0 }
  0xfa   :  { %v1028_v44 = vpop.f32.mrb[3].mxu1  ;;  %v625_v45 = vadd.f32 %v1004_v39, %v205_v36 }
  0xfc   :  { %v665_v46 = vadd.f32 %v1026_v40, %v625_v45 }
 0x116   :  { %v1046_v47 = vpop.f32.mrb[4].mxu0 }
 0x117   :  { %v1068_v48 = vpop.f32.mrb[4].mxu1  ;;  %v1047_v49 = vpop.f32.mrb[5].mxu0 }
 0x118   :  { %v1069_v50 = vpop.f32.mrb[5].mxu1  ;;  %v1048_v51 = vadd.f32 %v1047_v49, %v1046_v47  ;;  %v1049_v53 = vpop.f32.mrb[6].mxu0 }
 0x119   :  { %v1070_v52 = vadd.f32 %v1069_v50, %v1068_v48  ;;  %v1071_v54 = vpop.f32.mrb[6].mxu1  ;;  %v1050_v55 = vpop.f32.mrb[7].mxu0 }
 0x11a   :  { %v1072_v56 = vpop.f32.mrb[7].mxu1  ;;  %v705_v57 = vadd.f32 %v1048_v51, %v665_v46 }
 0x11c   :  { %v745_v58 = vadd.f32 %v1070_v52, %v705_v57 }
 0x11e   :  { %v750_v59 = vmax.f32 %v745_v58, 0.0 }
 0x120   :  { %v751_v60 = vpack.c.bf16 %v750_v59, %v750_v59 }
 0x122   :  { %1093 = vmatmul.mubr.msk.bf16.vlgmr.msra.gmra.mrb[8].mxu0 %vm785_vm1, %v751_v60 }
 0x1f5   :  { %v823_v0 = vpop.f32.mrb[8].mxu0 }
 0x1f6   :  { %v824_v1 = vadd.f32 %v823_v0, %v760_v63  ;;  %v1094_v2 = vpop.f32.mrb[9].mxu0 }
 0x1f7   :  { %v826_v3 = vpop.f32.mrb[10].mxu0 }
 0x1f8   :  { %v829_v4 = vmax.f32 %v824_v1, 0.0  ;;  %v1095_v5 = vpop.f32.mrb[11].mxu0 }
 0x1fa   :  { %v830_v6 = vpack.c.bf16 %v829_v4, %v829_v4 }
 0x1fc   :  { %1105 = vmatmul.mubr.msk.bf16.vlgmr.msra.gmra.mrb[8].mxu1 %vm785_vm1, %v830_v6 }
 0x2cf   :  { %v901_v8 = vpop.f32.mrb[8].mxu1 }
 0x2d0   :  { %v902_v9 = vadd.f32 %v901_v8, %v839_v7  ;;  %v1106_v10 = vpop.f32.mrb[9].mxu1 }
 0x2d1   :  { %v904_v11 = vpop.f32.mrb[10].mxu1 }
 0x2d2   :  { %907 = vst [vmem:[%s1484_s7] sm:$0x1] %v902_v9  ;;  %v1107_v12 = vpop.f32.mrb[11].mxu1 }

</bundles_post_ra>
